<compile_context>
chip_gen: v6e
topology: v6e:2x2x1
jax: 0.10.0
libtpu: 0.0.40
codegen_flags: <defaults>
</compile_context>

<pallas_src>
import functools
import math

import jax
import jax.numpy as jnp
from jax.experimental import pallas as pl
from jax.experimental.pallas import tpu as pltpu


def _round_up(a, b):
    return (a + b - 1) // b * b


def _matcher_kernel(x_ref, ty_ref, w_ref, b_ref, o_ref, *,
                    inv_temperature, inv_sqrt_hd, use_norm):
    # Linear: tx = x @ W^T + b, computed as x @ (pre-transposed W) on the MXU with
    # f32 accumulation regardless of input dtype.
    tx = jnp.dot(x_ref[...], w_ref[...],
                 preferred_element_type=jnp.float32)            # [TILE_M, n_out]
    tx = tx + b_ref[...].astype(jnp.float32)                    # bias broadcast over rows
    # TODO(synk): training-mode Dropout(p=0.2) (stochastic mask + 1/(1-p) scaling) is
    # omitted; the forward is implemented in eval/inference mode where dropout == id.

    ty = ty_ref[...].astype(jnp.float32)                        # no-op when ty is f32

    dot = jnp.sum(tx * ty, axis=-1, keepdims=True)              # [TILE_M, 1]
    if use_norm:
        # torch.nn.CosineSimilarity(dim=1): (tx . ty) / max(||tx|| * ||ty||, eps)
        nx = jnp.sum(tx * tx, axis=-1, keepdims=True)
        ny = jnp.sum(ty * ty, axis=-1, keepdims=True)
        denom = jnp.maximum(jnp.sqrt(nx * ny), 1e-8)
        res = dot / denom * inv_temperature
    else:
        res = dot * inv_sqrt_hd
    o_ref[...] = res.astype(o_ref.dtype)


def matcher_forward(x, ty, weight, bias, *, temperature=0.1, use_norm=True,
                    tile_m=1024):
    """x: [N, n_hid], ty: [N, n_out], weight: [n_out, n_hid], bias: [n_out] -> [N]."""
    n, n_hid = x.shape
    n_out, n_hid_w = weight.shape
    assert n_hid_w == n_hid and ty.shape == (n, n_out)

    # One-time XLA-side transpose: lane-major RHS (n_out on the lane axis).
    w_t = weight.T                      # [n_hid, n_out]
    bias2d = bias.reshape(1, n_out)

    # Row tiling: single full-extent block for small N, 128-aligned tiles otherwise.
    n_r8 = _round_up(n, 8)
    if n_r8 <= tile_m:
        tile_m = n_r8
    else:
        tile_m = _round_up(tile_m, 128)
    n_pad = _round_up(n, tile_m)
    if n_pad != n:
        # Zero padding is safe: padded rows produce finite garbage that is sliced off.
        x = jnp.pad(x, ((0, n_pad - n), (0, 0)))
        ty = jnp.pad(ty, ((0, n_pad - n), (0, 0)))
    grid = (n_pad // tile_m,)

    kernel = functools.partial(
        _matcher_kernel,
        inv_temperature=float(1.0 / temperature),
        inv_sqrt_hd=float(1.0 / math.sqrt(n_out)),
        use_norm=bool(use_norm),
    )

    out = pl.pallas_call(
        kernel,
        out_shape=jax.ShapeDtypeStruct((n_pad, 1), jnp.float32),
        grid=grid,
        in_specs=[
            pl.BlockSpec((tile_m, n_hid), lambda i: (i, 0)),   # x rows, pipelined
            pl.BlockSpec((tile_m, n_out), lambda i: (i, 0)),   # ty rows, pipelined
            pl.BlockSpec((n_hid, n_out), lambda i: (0, 0)),    # weight: VMEM-resident
            pl.BlockSpec((1, n_out), lambda i: (0, 0)),        # bias:   VMEM-resident
        ],
        out_specs=pl.BlockSpec((tile_m, 1), lambda i: (i, 0)),
        compiler_params=pltpu.CompilerParams(
            dimension_semantics=("parallel",),
            vmem_limit_bytes=32 * 1024 * 1024,
        ),
    )(x, ty, w_t, bias2d)

    return out[:n, 0]


if __name__ == "__main__":
    # Small shapes consistent with the module: N=16 node pairs, n_hid=32, n_out=16.
    N, N_HID, N_OUT = 16, 32, 16
    TEMPERATURE = 0.1

    key = jax.random.PRNGKey(0)
    kx, kt, kw, kb, kx2, kt2 = jax.random.split(key, 6)

    # nn.Linear-style uniform(-1/sqrt(fan_in), 1/sqrt(fan_in)) init.
    bound = 1.0 / math.sqrt(N_HID)
    weight = jax.random.uniform(kw, (N_OUT, N_HID), jnp.float32, -bound, bound)
    bias = jax.random.uniform(kb, (N_OUT,), jnp.float32, -bound, bound)
    x = jax.random.normal(kx, (N, N_HID), jnp.float32)
    ty = jax.random.normal(kt, (N, N_OUT), jnp.float32)

    def ref_forward(xv, tyv, use_norm):
        tx = xv @ weight.T + bias                 # dropout == identity at inference
        dot = (tx * tyv).sum(-1)
        if use_norm:
            denom = jnp.maximum(
                jnp.linalg.norm(tx, axis=-1) * jnp.linalg.norm(tyv, axis=-1), 1e-8)
            return dot / denom / TEMPERATURE
        return dot / math.sqrt(N_OUT)

    # Default path: cosine similarity / temperature.
    out = jax.block_until_ready(
        matcher_forward(x, ty, weight, bias, temperature=TEMPERATURE, use_norm=True))
    assert out.shape == (N,)
    assert jnp.allclose(out, ref_forward(x, ty, True), atol=1e-4, rtol=1e-4), \
        "mismatch vs reference (use_norm=True)"

    # Un-normalized path: (tx*ty).sum(-1) / sqrt(n_out).
    out2 = jax.block_until_ready(
        matcher_forward(x, ty, weight, bias, temperature=TEMPERATURE, use_norm=False))
    assert jnp.allclose(out2, ref_forward(x, ty, False), atol=1e-4, rtol=1e-4), \
        "mismatch vs reference (use_norm=False)"

    # Larger N exercising the multi-block row grid + padding path.
    N2 = 300
    x2 = jax.random.normal(kx2, (N2, N_HID), jnp.float32)
    ty2 = jax.random.normal(kt2, (N2, N_OUT), jnp.float32)
    out3 = jax.block_until_ready(
        matcher_forward(x2, ty2, weight, bias, temperature=TEMPERATURE,
                        use_norm=True, tile_m=128))
    assert out3.shape == (N2,)
    assert jnp.allclose(out3, ref_forward(x2, ty2, True), atol=1e-4, rtol=1e-4), \
        "mismatch vs reference (gridded, padded N)"

    print("KERNEL_OK")
</pallas_src>

<mosaic_0001>
module attributes {stable_mosaic.version = 11 : i64} {
  func.func @_matcher_kernel(%arg0: i32, %arg1: memref<16x32xf32, #tpu.memory_space<vmem>>, %arg2: memref<16x16xf32, #tpu.memory_space<vmem>>, %arg3: memref<32x16xf32, #tpu.memory_space<vmem>>, %arg4: memref<1x16xf32, #tpu.memory_space<vmem>>, %arg5: memref<16x1xf32, #tpu.memory_space<vmem>>) attributes {dimension_semantics = [#tpu.dimension_semantics<parallel>], iteration_bounds = array<i64: 1>, scalar_prefetch = 0 : i64, scratch_operands = 0 : i64, tpu.core_type = #tpu.core_type<tc>, window_params = [{transform_indices = @transform_0, window_bounds = array<i64: 16, 32>}, {transform_indices = @transform_1, window_bounds = array<i64: 16, 16>}, {pipeline_mode = #tpu.pipeline_mode<synchronous>, transform_indices = @transform_2, window_bounds = array<i64: 32, 16>}, {pipeline_mode = #tpu.pipeline_mode<synchronous>, transform_indices = @transform_3, window_bounds = array<i64: 1, 16>}, {transform_indices = @transform_4, window_bounds = array<i64: 16, 1>}]} {
    %c0 = arith.constant 0 : index
    %c0_0 = arith.constant 0 : index
    %0 = vector.load %arg1[%c0, %c0_0] : memref<16x32xf32, #tpu.memory_space<vmem>>, vector<16x32xf32>
    %c0_1 = arith.constant 0 : index
    %c0_2 = arith.constant 0 : index
    %1 = vector.load %arg3[%c0_1, %c0_2] : memref<32x16xf32, #tpu.memory_space<vmem>>, vector<32x16xf32>
    %cst = arith.constant dense<0.000000e+00> : vector<16x16xf32>
    %2 = tpu.matmul %0, %1, %cst {dimension_numbers = #tpu.dot_dimension_numbers<[1], [0], [0], [1], [0, 0, 1, 1], [], []>} : vector<16x32xf32>, vector<32x16xf32>, vector<16x16xf32> -> vector<16x16xf32>
    %c0_3 = arith.constant 0 : index
    %c0_4 = arith.constant 0 : index
    %3 = vector.load %arg4[%c0_3, %c0_4] : memref<1x16xf32, #tpu.memory_space<vmem>>, vector<1x16xf32>
    %4 = vector.broadcast %3 : vector<1x16xf32> to vector<16x16xf32>
    %5 = arith.addf %2, %4 : vector<16x16xf32>
    %c0_5 = arith.constant 0 : index
    %c0_6 = arith.constant 0 : index
    %6 = vector.load %arg2[%c0_5, %c0_6] : memref<16x16xf32, #tpu.memory_space<vmem>>, vector<16x16xf32>
    %7 = arith.mulf %5, %6 : vector<16x16xf32>
    %cst_7 = arith.constant dense<0.000000e+00> : vector<16xf32>
    %8 = vector.multi_reduction <add>, %7, %cst_7 [1] : vector<16x16xf32> to vector<16xf32>
    %9 = vector.shape_cast %8 : vector<16xf32> to vector<16x1xf32>
    %10 = arith.mulf %5, %5 : vector<16x16xf32>
    %cst_8 = arith.constant dense<0.000000e+00> : vector<16xf32>
    %11 = vector.multi_reduction <add>, %10, %cst_8 [1] : vector<16x16xf32> to vector<16xf32>
    %12 = vector.shape_cast %11 : vector<16xf32> to vector<16x1xf32>
    %13 = arith.mulf %6, %6 : vector<16x16xf32>
    %cst_9 = arith.constant dense<0.000000e+00> : vector<16xf32>
    %14 = vector.multi_reduction <add>, %13, %cst_9 [1] : vector<16x16xf32> to vector<16xf32>
    %15 = vector.shape_cast %14 : vector<16xf32> to vector<16x1xf32>
    %16 = arith.mulf %12, %15 : vector<16x1xf32>
    %17 = math.sqrt %16 : vector<16x1xf32>
    %cst_10 = arith.constant 9.99999993E-9 : f32
    %18 = vector.broadcast %cst_10 : f32 to vector<16x1xf32>
    %19 = arith.maximumf %17, %18 : vector<16x1xf32>
    %20 = arith.divf %9, %19 : vector<16x1xf32>
    %cst_11 = arith.constant 1.000000e+01 : f32
    %21 = vector.broadcast %cst_11 : f32 to vector<16x1xf32>
    %22 = arith.mulf %20, %21 : vector<16x1xf32>
    %c0_12 = arith.constant 0 : index
    %c0_13 = arith.constant 0 : index
    %23 = vector.load %arg5[%c0_12, %c0_13] : memref<16x1xf32, #tpu.memory_space<vmem>>, vector<16x1xf32>
    tpu.vector_store %arg5[%c0_12, %c0_13], %22 {strides = array<i32>} : memref<16x1xf32, #tpu.memory_space<vmem>>, vector<16x1xf32>,
    return
  }
  func.func @transform_0(%arg0: i32) -> (i32, i32) {
    %c0_i32 = arith.constant 0 : i32
    %c0_i32_0 = arith.constant 0 : i32
    return %arg0, %c0_i32 : i32, i32
  }
  func.func @transform_1(%arg0: i32) -> (i32, i32) {
    %c0_i32 = arith.constant 0 : i32
    %c0_i32_0 = arith.constant 0 : i32
    return %arg0, %c0_i32 : i32, i32
  }
  func.func @transform_2(%arg0: i32) -> (i32, i32) {
    %c0_i32 = arith.constant 0 : i32
    %c0_i32_0 = arith.constant 0 : i32
    %c0_i32_1 = arith.constant 0 : i32
    return %c0_i32, %c0_i32_0 : i32, i32
  }
  func.func @transform_3(%arg0: i32) -> (i32, i32) {
    %c0_i32 = arith.constant 0 : i32
    %c0_i32_0 = arith.constant 0 : i32
    %c0_i32_1 = arith.constant 0 : i32
    return %c0_i32, %c0_i32_0 : i32, i32
  }
  func.func @transform_4(%arg0: i32) -> (i32, i32) {
    %c0_i32 = arith.constant 0 : i32
    %c0_i32_0 = arith.constant 0 : i32
    return %arg0, %c0_i32 : i32, i32
  }
}

</mosaic_0001>

<bundles_post_ra>
// kernel: tpu_custom_call.1
= control target key start
LH: loop header
LB: loop body
LE: loop exit
PB: predicated region body
PF: predicated region fallthrough
CT: control target
= control target key end

     0   :  { %vm30_vm0 = vcmask 261120   ;;  %vm116_vm1 = vcmask 130048   ;;  %vm163_vm6 = vcmask 7168   ;;  %s264_s2 = inlined_call_operand.vmem [shape: f32[32,16], index: 2, kind: input, shape index: {}]   ;;  %s265_s0 = inlined_call_operand.vmem [shape: f32[16,32], index: 0, kind: input, shape index: {}]   ;;  %s266_s1 = inlined_call_operand.vmem [shape: f32[16,16], index: 1, kind: input, shape index: {}]   ;;  %s267_s3 = inlined_call_operand.vmem [shape: f32[1,16], index: 3, kind: input, shape index: {}]   ;;  %s268_s4 = inlined_call_operand.vmem [shape: f32[16,1], index: 4, kind: output, shape index: {}]  }
   0x1   :  { %v22_v0 = vld [vmem:[%s264_s2 + $0x18] sm:$0xff]  ;;  %v21_v1 = vld [vmem:[%s264_s2 + $0x10] sm:$0xff]  ;;  %v17_v2 = vld [vmem:[%s265_s0] sm:$0xff] }
   0x2   :  { %179 = vmatprep.subr.mxu0 %v22_v0  ;;  %v20_v3 = vld [vmem:[%s264_s2 + $0x8] sm:$0xff]  ;;  %187 = vmatprep.mubr.msk.f32.mxu0 %vm30_vm0, %v17_v2  ;;  %v112_v4 = vld [vmem:[%s266_s1] sm:$0xff] }
   0x3   :  { %180 = vmatpush3.msra.mxu0 %v22_v0  ;;  %v131_v5 = vmul.f32 %v112_v4, %v112_v4  ;;  %v19_v6 = vld [vmem:[%s264_s2] sm:$0xff]  ;;  %v18_v8 = vld [vmem:[%s265_s0 + $0x8] sm:$0xff] }
   0x4   :  { %181 = vmatprep.subr.mxu0 %v21_v1  ;;  %v113_v9 = vld [vmem:[%s266_s1 + $0x8] sm:$0xff]  ;;  %v170_v12 = vld [vmem:[%s267_s3] ss:$0 sm:$0xff] }
   0x5   :  { %182 = vmatpush3.msra.mxu0 %v21_v1  ;;  %v133_v7 = vsel %vm116_vm1, %v131_v5, 0.0  ;;  %v132_v10 = vmul.f32 %v113_v9, %v113_v9 }
   0x6   :  { %183 = vmatprep.subr.mxu0 %v20_v3  ;;  %134 = vadd.xlane.f32.xlu1 %v133_v7 }
   0x7   :  { %184 = vmatpush3.msra.mxu0 %v20_v3  ;;  %v136_v11 = vsel %vm116_vm1, %v132_v10, 0.0 }
   0x8   :  { %185 = vmatprep.subr.mxu0 %v19_v6 }
   0x9   :  { %186 = vmatpush3.msra.mxu0 %v19_v6 }
   0xa   :  { %188 = vmatmul.mubr.msk.f32.vlgmr.msra.gmra.mxu0 %vm30_vm0, %v18_v8  ;;  %137 = vadd.xlane.f32.xlu1 %v136_v11 }
  0x8f   :  { %v135_v25 = vpop.xlane.xlu1 %134 }
  0x93   :  { %v138_v28 = vpop.xlane.xlu1 %137 }
  0xca   :  { %v189_v13 = vpop.f32.mrf.mxu0 }
  0xcb   :  { %v109_v14 = vadd.f32 %v189_v13, %v170_v12 }
  0xcc   :  { %v103_v15 = vpop.f32.mrf.mxu0 }
  0xcd   :  { %v104_v16 = vadd.f32 %v170_v12, %v103_v15  ;;  %v115_v17 = vmul.f32 %v113_v9, %v109_v14  ;;  %v124_v21 = vmul.f32 %v109_v14, %v109_v14 }
  0xcf   :  { %v120_v18 = vsel %vm116_vm1, %v115_v17, 0.0  ;;  %v123_v19 = vmul.f32 %v104_v16, %v104_v16  ;;  %v128_v22 = vsel %vm116_vm1, %v124_v21, 0.0  ;;  %v114_v23 = vmul.f32 %v112_v4, %v104_v16 }
  0xd0   :  { %121 = vadd.xlane.f32.xlu1 %v120_v18 }
  0xd1   :  { %v125_v20 = vsel %vm116_vm1, %v123_v19, 0.0  ;;  %v117_v24 = vsel %vm116_vm1, %v114_v23, 0.0 }
  0xd2   :  { %126 = vadd.xlane.f32.xlu0 %v125_v20 }
  0xd6   :  { %129 = vadd.xlane.f32.xlu0 %v128_v22 }
  0xda   :  { %118 = vadd.xlane.f32.xlu0 %v117_v24 }
 0x159   :  { %v122_v48 = vpop.xlane.xlu1 %121 }
 0x15b   :  { %v127_v26 = vpop.xlane.xlu0 %126 }
 0x15c   :  { %v139_v27 = vmul.f32 %v135_v25, %v127_v26 }
 0x15e   :  { %190 = vrsqrt.f32 %v139_v27  ;;  %vm143_vm2 = vcmp.eq.f32.partialorder %v139_v27, inf  ;;  %v146_v33 = vand.u32 2147483648, %v139_v27  ;;  %vm145_vm3 = vcmp.eq.f32.partialorder %v139_v27, 0.0 }
 0x15f   :  { %v130_v29 = vpop.xlane.xlu0 %129 }
 0x160   :  { %v140_v30 = vmul.f32 %v138_v28, %v130_v29 }
 0x162   :  { %192 = vrsqrt.f32 %v140_v30  ;;  %vm150_vm4 = vcmp.eq.f32.partialorder %v140_v30, inf  ;;  %v153_v39 = vand.u32 2147483648, %v140_v30  ;;  %vm152_vm5 = vcmp.eq.f32.partialorder %v140_v30, 0.0 }
 0x163   :  { %v119_v44 = vpop.xlane.xlu0 %118 }
 0x16b   :  { %v191_v31 = vpop.eup %190 }
 0x16c   :  { %v142_v32 = vmul.f32 %v191_v31, %v139_v27 }
 0x16e   :  { %v144_v34 = vsel %vm143_vm2, %v139_v27, %v142_v32 }
 0x16f   :  { %v193_v35 = vpop.eup %192  ;;  %v147_v36 = vsel %vm145_vm3, %v146_v33, %v144_v34 }
 0x170   :  { %v149_v37 = vmul.f32 %v193_v35, %v140_v30  ;;  %v155_v38 = vmax.f32 %v147_v36, 1e-08 }
 0x172   :  { %v151_v40 = vsel %vm150_vm4, %v140_v30, %v149_v37  ;;  %194 = vrcp.f32 %v155_v38 }
 0x173   :  { %v154_v41 = vsel %vm152_vm5, %v153_v39, %v151_v40 }
 0x174   :  { %v156_v42 = vmax.f32 %v154_v41, 1e-08 }
 0x176   :  { %196 = vrcp.f32 %v156_v42 }
 0x17f   :  { %v195_v43 = vpop.eup %194 }
 0x180   :  { %v158_v45 = vmul.f32 %v195_v43, %v119_v44 }
 0x182   :  { %v161_v46 = vmul.f32 10.0, %v158_v45 }
 0x183   :  { %v197_v47 = vpop.eup %196 }
 0x184   :  { %v160_v49 = vmul.f32 %v197_v47, %v122_v48  ;;  %164 = vst.msk [vmem:[%s268_s4] sm:$0xff] %vm163_vm6, %v161_v46 }
 0x186   :  { %v162_v50 = vmul.f32 10.0, %v160_v49 }
 0x188   :  { %165 = vst.msk [vmem:[%s268_s4 + $0x8] sm:$0xff] %vm163_vm6, %v162_v50 }

</bundles_post_ra>
